<compile_context>
chip_gen: v7x
topology: tpu7x:2x2x1
jax: 0.10.0
libtpu: 0.0.40
codegen_flags: <defaults>
</compile_context>

<pallas_src>
import numpy as np
import jax
import jax.numpy as jnp
from jax.experimental import pallas as pl
from jax.experimental.pallas import tpu as pltpu

# SH constants (identical to the PyTorch module)
C0 = 0.28209479177387814
C1 = 0.4886025119029199
C2 = [1.0925484305920792, -1.0925484305920792, 0.31539156525252005,
      -1.0925484305920792, 0.5462742152960396]
C3 = [-0.5900435899266435, 2.890611442640554, -0.4570457994644658,
      0.3731763325901154, -0.4570457994644658, 1.445305721320277,
      -0.5900435899266435]
C4 = [2.5033429417967046, -1.7701307697799304, 0.9461746957575601,
      -0.6690465435572892, 0.10578554691520431, -0.6690465435572892,
      0.47308734787878004, -1.7701307697799304, 0.6258357354491761]

LANE = 128
SUBLANE = 8


def _make_sh_kernel(degree):
    """Kernel factory: emits the first degree**2 SH basis rows."""

    def kernel(xyz_ref, out_ref):
        # xyz_ref: (3, tile_r, 128) block ; out_ref: (dims, tile_r, 128) block
        dt = out_ref.dtype
        x = xyz_ref[0].astype(jnp.float32)
        y = xyz_ref[1].astype(jnp.float32)
        z = xyz_ref[2].astype(jnp.float32)

        out_ref[0] = jnp.full(x.shape, C0, dtype=dt)                  # l=0
        if degree > 1:                                                 # l=1
            out_ref[1] = (-C1 * y).astype(dt)
            out_ref[2] = (C1 * z).astype(dt)
            out_ref[3] = (-C1 * x).astype(dt)
        if degree > 2:                                                 # l=2
            xx, yy, zz = x * x, y * y, z * z
            xy, yz, xz = x * y, y * z, x * z
            xx_m_yy = xx - yy
            xx_p_yy = xx + yy
            out_ref[4] = (C2[0] * xy).astype(dt)
            out_ref[5] = (C2[1] * yz).astype(dt)
            out_ref[6] = (C2[2] * (2.0 * zz - xx_p_yy)).astype(dt)
            out_ref[7] = (C2[3] * xz).astype(dt)
            out_ref[8] = (C2[4] * xx_m_yy).astype(dt)
        if degree > 3:                                                 # l=3
            t4 = 4.0 * zz - xx_p_yy
            out_ref[9] = (C3[0] * y * (3.0 * xx - yy)).astype(dt)
            out_ref[10] = (C3[1] * xy * z).astype(dt)
            out_ref[11] = (C3[2] * y * t4).astype(dt)
            out_ref[12] = (C3[3] * z * (2.0 * zz - 3.0 * xx_p_yy)).astype(dt)
            out_ref[13] = (C3[4] * x * t4).astype(dt)
            out_ref[14] = (C3[5] * z * xx_m_yy).astype(dt)
            out_ref[15] = (C3[6] * x * (xx - 3.0 * yy)).astype(dt)
        if degree > 4:                                                 # l=4
            zz7m1 = 7.0 * zz - 1.0
            zz7m3 = 7.0 * zz - 3.0
            x_m3y = xx - 3.0 * yy
            y_3xm = 3.0 * xx - yy
            out_ref[16] = (C4[0] * xy * xx_m_yy).astype(dt)
            out_ref[17] = (C4[1] * yz * y_3xm).astype(dt)
            out_ref[18] = (C4[2] * xy * zz7m1).astype(dt)
            out_ref[19] = (C4[3] * yz * zz7m3).astype(dt)
            out_ref[20] = (C4[4] * (zz * (35.0 * zz - 30.0) + 3.0)).astype(dt)
            out_ref[21] = (C4[5] * xz * zz7m3).astype(dt)
            out_ref[22] = (C4[6] * xx_m_yy * zz7m1).astype(dt)
            out_ref[23] = (C4[7] * xz * x_m3y).astype(dt)
            out_ref[24] = (C4[8] * (xx * x_m3y - yy * y_3xm)).astype(dt)

    return kernel


def _sh_encode_impl(inp, degree, tile_n):
    """Core pallas_call. Returns (planar (dims, N_pad), N, orig_shape, dims)."""
    orig_shape = inp.shape
    assert orig_shape[-1] == 3, orig_shape
    assert 1 <= degree <= 5, degree
    dims = degree * degree
    dtype = inp.dtype
    itemsize = np.dtype(dtype).itemsize
    N = int(np.prod(orig_shape[:-1])) if len(orig_shape) > 1 else 1

    # --- tile planning -------------------------------------------------------
    # Dtype-aware sublane packing: 8 rows for 4-byte, 16 for 2-byte, 32 for
    # 1-byte dtypes; the smallest legal tile is (pack sublanes x 128 lanes).
    pack = max(SUBLANE, 32 // itemsize)
    unit = LANE * pack                                   # points per work unit
    tile_n = max(unit, (int(tile_n) // unit) * unit)     # sanitize user tile
    units = -(-N // unit)                                # ceil-div
    units_per_tile = min(tile_n // unit, units)
    if units >= 2:
        # Guarantee >= 2 grid steps so both v7x TensorCores get work on the
        # "parallel" axis (a single-step grid would idle half the chip).
        units_per_tile = min(units_per_tile, -(-units // 2))
    num_tiles = -(-units // units_per_tile)
    tile_points = units_per_tile * unit
    N_pad = tile_points * num_tiles
    tile_r = tile_points // LANE                         # multiple of `pack`
    R = N_pad // LANE

    # --- input layout: (N,3) -> (3, N_pad) in one fused copy pass ------------
    flat = inp.reshape(N, 3)
    xyz = jnp.pad(flat.T, ((0, 0), (0, N_pad - N))).reshape(3, R, LANE)

    # --- VMEM budget: double-buffered in+out blocks, with headroom -----------
    vmem_need = 2 * (3 + dims) * tile_r * LANE * itemsize + (4 << 20)
    vmem_limit = int(min(56 << 20, max(32 << 20, vmem_need)))

    cost = pl.CostEstimate(
        flops=4 * dims * N_pad,
        transcendentals=0,
        bytes_accessed=(3 + dims) * N_pad * itemsize,
    )

    out = pl.pallas_call(
        _make_sh_kernel(degree),
        out_shape=jax.ShapeDtypeStruct((dims, R, LANE), dtype),
        grid=(num_tiles,),
        in_specs=[pl.BlockSpec((3, tile_r, LANE), lambda i: (0, i, 0))],
        out_specs=pl.BlockSpec((dims, tile_r, LANE), lambda i: (0, i, 0)),
        compiler_params=pltpu.CompilerParams(
            dimension_semantics=("parallel",),
            vmem_limit_bytes=vmem_limit),
        cost_estimate=cost,
    )(xyz)

    planar = out.reshape(dims, N_pad)      # memory-identical reshape
    return planar, N, orig_shape, dims


def sh_encode(inp, degree=4, tile_n=131072):
    """PyTorch-compatible forward: inp (..., 3) -> ((..., degree**2), None).

    Note: the final channel-major -> point-major transpose is a second HBM
    pass required only by the (..., dims) output contract; use
    `sh_encode_planar` when the consumer can take channel-major features.
    """
    planar, N, orig_shape, dims = _sh_encode_impl(inp, degree, tile_n)
    result = planar[:, :N].T.reshape(*orig_shape[:-1], dims)
    return result, None


def sh_encode_planar(inp, degree=4, tile_n=131072):
    """Fast path: returns channel-major SH features of shape (degree**2, ...),
    skipping the point-major transpose (saves ~128 B/point of HBM traffic)."""
    planar, N, orig_shape, dims = _sh_encode_impl(inp, degree, tile_n)
    return planar[:, :N].reshape(dims, *orig_shape[:-1])


def sh_reference(inp, degree=4):
    """Pure-JAX reference mirroring the PyTorch forward."""
    x, y, z = inp[..., 0], inp[..., 1], inp[..., 2]
    cols = [jnp.full_like(x, C0)]
    if degree > 1:
        cols += [-C1 * y, C1 * z, -C1 * x]
    if degree > 2:
        xx, yy, zz = x * x, y * y, z * z
        xy, yz, xz = x * y, y * z, x * z
        cols += [C2[0] * xy, C2[1] * yz, C2[2] * (2.0 * zz - xx - yy),
                 C2[3] * xz, C2[4] * (xx - yy)]
    if degree > 3:
        cols += [C3[0] * y * (3 * xx - yy),
                 C3[1] * xy * z,
                 C3[2] * y * (4 * zz - xx - yy),
                 C3[3] * z * (2 * zz - 3 * xx - 3 * yy),
                 C3[4] * x * (4 * zz - xx - yy),
                 C3[5] * z * (xx - yy),
                 C3[6] * x * (xx - 3 * yy)]
    if degree > 4:
        cols += [C4[0] * xy * (xx - yy),
                 C4[1] * yz * (3 * xx - yy),
                 C4[2] * xy * (7 * zz - 1),
                 C4[3] * yz * (7 * zz - 3),
                 C4[4] * (zz * (35 * zz - 30) + 3),
                 C4[5] * xz * (7 * zz - 3),
                 C4[6] * (xx - yy) * (7 * zz - 1),
                 C4[7] * xz * (xx - 3 * yy),
                 C4[8] * (xx * (xx - 3 * yy) - yy * (3 * xx - yy))]
    return jnp.stack(cols, axis=-1)


if __name__ == "__main__":
    key = jax.random.PRNGKey(0)
    # Small batch of 3-D direction vectors, consistent with the module.
    x = jax.random.normal(key, (2, 64, 3), dtype=jnp.float32)

    # f32, degree=4 (module default)
    result, extra = sh_encode(x)
    result = jax.block_until_ready(result)
    assert result.shape == (2, 64, 16), result.shape
    assert extra is None
    ref = sh_reference(x, degree=4)
    np.testing.assert_allclose(np.asarray(result), np.asarray(ref),
                               rtol=1e-5, atol=1e-5)

    # bf16 path exercises the dtype-aware sublane rounding (tile_r % 16 == 0).
    xb = x.astype(jnp.bfloat16)
    rb, _ = sh_encode(xb)
    rb = jax.block_until_ready(rb)
    assert rb.dtype == jnp.bfloat16 and rb.shape == (2, 64, 16)
    refb = sh_reference(xb.astype(jnp.float32), degree=4).astype(jnp.bfloat16)
    np.testing.assert_allclose(np.asarray(rb.astype(jnp.float32)),
                               np.asarray(refb.astype(jnp.float32)),
                               rtol=2e-2, atol=2e-2)

    print("KERNEL_OK")
</pallas_src>

<mosaic_0001>
module attributes {stable_mosaic.version = 11 : i64} {
  func.func @kernel(%arg0: i32, %arg1: memref<3x8x128xf32, #tpu.memory_space<vmem>>, %arg2: memref<16x8x128xf32, #tpu.memory_space<vmem>>) attributes {dimension_semantics = [#tpu.dimension_semantics<parallel>], iteration_bounds = array<i64: 1>, scalar_prefetch = 0 : i64, scratch_operands = 0 : i64, tpu.core_type = #tpu.core_type<tc>, window_params = [{transform_indices = @transform_0, window_bounds = array<i64: 3, 8, 128>}, {transform_indices = @transform_1, window_bounds = array<i64: 16, 8, 128>}]} {
    %c0 = arith.constant 0 : index
    %c0_0 = arith.constant 0 : index
    %c0_1 = arith.constant 0 : index
    %0 = vector.load %arg1[%c0, %c0_0, %c0_1] : memref<3x8x128xf32, #tpu.memory_space<vmem>>, vector<1x8x128xf32>
    %1 = vector.shape_cast %0 : vector<1x8x128xf32> to vector<8x128xf32>
    %c1 = arith.constant 1 : index
    %c0_2 = arith.constant 0 : index
    %c0_3 = arith.constant 0 : index
    %2 = vector.load %arg1[%c1, %c0_2, %c0_3] : memref<3x8x128xf32, #tpu.memory_space<vmem>>, vector<1x8x128xf32>
    %3 = vector.shape_cast %2 : vector<1x8x128xf32> to vector<8x128xf32>
    %c2 = arith.constant 2 : index
    %c0_4 = arith.constant 0 : index
    %c0_5 = arith.constant 0 : index
    %4 = vector.load %arg1[%c2, %c0_4, %c0_5] : memref<3x8x128xf32, #tpu.memory_space<vmem>>, vector<1x8x128xf32>
    %5 = vector.shape_cast %4 : vector<1x8x128xf32> to vector<8x128xf32>
    %cst = arith.constant 0.282094806 : f32
    %6 = vector.broadcast %cst : f32 to vector<8x128xf32>
    %c0_6 = arith.constant 0 : index
    %c0_7 = arith.constant 0 : index
    %c0_8 = arith.constant 0 : index
    %7 = vector.load %arg2[%c0_6, %c0_7, %c0_8] : memref<16x8x128xf32, #tpu.memory_space<vmem>>, vector<1x8x128xf32>
    %8 = vector.shape_cast %7 : vector<1x8x128xf32> to vector<8x128xf32>
    %9 = vector.shape_cast %6 : vector<8x128xf32> to vector<1x8x128xf32>
    tpu.vector_store %arg2[%c0_6, %c0_7, %c0_8], %9 {strides = array<i32>} : memref<16x8x128xf32, #tpu.memory_space<vmem>>, vector<1x8x128xf32>,
    %cst_9 = arith.constant -0.488602519 : f32
    %10 = vector.broadcast %cst_9 : f32 to vector<8x128xf32>
    %11 = arith.mulf %10, %3 : vector<8x128xf32>
    %c1_10 = arith.constant 1 : index
    %c0_11 = arith.constant 0 : index
    %c0_12 = arith.constant 0 : index
    %12 = vector.load %arg2[%c1_10, %c0_11, %c0_12] : memref<16x8x128xf32, #tpu.memory_space<vmem>>, vector<1x8x128xf32>
    %13 = vector.shape_cast %12 : vector<1x8x128xf32> to vector<8x128xf32>
    %14 = vector.shape_cast %11 : vector<8x128xf32> to vector<1x8x128xf32>
    tpu.vector_store %arg2[%c1_10, %c0_11, %c0_12], %14 {strides = array<i32>} : memref<16x8x128xf32, #tpu.memory_space<vmem>>, vector<1x8x128xf32>,
    %cst_13 = arith.constant 0.488602519 : f32
    %15 = vector.broadcast %cst_13 : f32 to vector<8x128xf32>
    %16 = arith.mulf %15, %5 : vector<8x128xf32>
    %c2_14 = arith.constant 2 : index
    %c0_15 = arith.constant 0 : index
    %c0_16 = arith.constant 0 : index
    %17 = vector.load %arg2[%c2_14, %c0_15, %c0_16] : memref<16x8x128xf32, #tpu.memory_space<vmem>>, vector<1x8x128xf32>
    %18 = vector.shape_cast %17 : vector<1x8x128xf32> to vector<8x128xf32>
    %19 = vector.shape_cast %16 : vector<8x128xf32> to vector<1x8x128xf32>
    tpu.vector_store %arg2[%c2_14, %c0_15, %c0_16], %19 {strides = array<i32>} : memref<16x8x128xf32, #tpu.memory_space<vmem>>, vector<1x8x128xf32>,
    %cst_17 = arith.constant -0.488602519 : f32
    %20 = vector.broadcast %cst_17 : f32 to vector<8x128xf32>
    %21 = arith.mulf %20, %1 : vector<8x128xf32>
    %c3 = arith.constant 3 : index
    %c0_18 = arith.constant 0 : index
    %c0_19 = arith.constant 0 : index
    %22 = vector.load %arg2[%c3, %c0_18, %c0_19] : memref<16x8x128xf32, #tpu.memory_space<vmem>>, vector<1x8x128xf32>
    %23 = vector.shape_cast %22 : vector<1x8x128xf32> to vector<8x128xf32>
    %24 = vector.shape_cast %21 : vector<8x128xf32> to vector<1x8x128xf32>
    tpu.vector_store %arg2[%c3, %c0_18, %c0_19], %24 {strides = array<i32>} : memref<16x8x128xf32, #tpu.memory_space<vmem>>, vector<1x8x128xf32>,
    %25 = arith.mulf %1, %1 : vector<8x128xf32>
    %26 = arith.mulf %3, %3 : vector<8x128xf32>
    %27 = arith.mulf %5, %5 : vector<8x128xf32>
    %28 = arith.mulf %1, %3 : vector<8x128xf32>
    %29 = arith.mulf %3, %5 : vector<8x128xf32>
    %30 = arith.mulf %1, %5 : vector<8x128xf32>
    %31 = arith.subf %25, %26 : vector<8x128xf32>
    %32 = arith.addf %25, %26 : vector<8x128xf32>
    %cst_20 = arith.constant 1.09254849 : f32
    %33 = vector.broadcast %cst_20 : f32 to vector<8x128xf32>
    %34 = arith.mulf %33, %28 : vector<8x128xf32>
    %c4 = arith.constant 4 : index
    %c0_21 = arith.constant 0 : index
    %c0_22 = arith.constant 0 : index
    %35 = vector.load %arg2[%c4, %c0_21, %c0_22] : memref<16x8x128xf32, #tpu.memory_space<vmem>>, vector<1x8x128xf32>
    %36 = vector.shape_cast %35 : vector<1x8x128xf32> to vector<8x128xf32>
    %37 = vector.shape_cast %34 : vector<8x128xf32> to vector<1x8x128xf32>
    tpu.vector_store %arg2[%c4, %c0_21, %c0_22], %37 {strides = array<i32>} : memref<16x8x128xf32, #tpu.memory_space<vmem>>, vector<1x8x128xf32>,
    %cst_23 = arith.constant -1.09254849 : f32
    %38 = vector.broadcast %cst_23 : f32 to vector<8x128xf32>
    %39 = arith.mulf %38, %29 : vector<8x128xf32>
    %c5 = arith.constant 5 : index
    %c0_24 = arith.constant 0 : index
    %c0_25 = arith.constant 0 : index
    %40 = vector.load %arg2[%c5, %c0_24, %c0_25] : memref<16x8x128xf32, #tpu.memory_space<vmem>>, vector<1x8x128xf32>
    %41 = vector.shape_cast %40 : vector<1x8x128xf32> to vector<8x128xf32>
    %42 = vector.shape_cast %39 : vector<8x128xf32> to vector<1x8x128xf32>
    tpu.vector_store %arg2[%c5, %c0_24, %c0_25], %42 {strides = array<i32>} : memref<16x8x128xf32, #tpu.memory_space<vmem>>, vector<1x8x128xf32>,
    %cst_26 = arith.constant 2.000000e+00 : f32
    %43 = vector.broadcast %cst_26 : f32 to vector<8x128xf32>
    %44 = arith.mulf %43, %27 : vector<8x128xf32>
    %45 = arith.subf %44, %32 : vector<8x128xf32>
    %cst_27 = arith.constant 0.31539157 : f32
    %46 = vector.broadcast %cst_27 : f32 to vector<8x128xf32>
    %47 = arith.mulf %46, %45 : vector<8x128xf32>
    %c6 = arith.constant 6 : index
    %c0_28 = arith.constant 0 : index
    %c0_29 = arith.constant 0 : index
    %48 = vector.load %arg2[%c6, %c0_28, %c0_29] : memref<16x8x128xf32, #tpu.memory_space<vmem>>, vector<1x8x128xf32>
    %49 = vector.shape_cast %48 : vector<1x8x128xf32> to vector<8x128xf32>
    %50 = vector.shape_cast %47 : vector<8x128xf32> to vector<1x8x128xf32>
    tpu.vector_store %arg2[%c6, %c0_28, %c0_29], %50 {strides = array<i32>} : memref<16x8x128xf32, #tpu.memory_space<vmem>>, vector<1x8x128xf32>,
    %cst_30 = arith.constant -1.09254849 : f32
    %51 = vector.broadcast %cst_30 : f32 to vector<8x128xf32>
    %52 = arith.mulf %51, %30 : vector<8x128xf32>
    %c7 = arith.constant 7 : index
    %c0_31 = arith.constant 0 : index
    %c0_32 = arith.constant 0 : index
    %53 = vector.load %arg2[%c7, %c0_31, %c0_32] : memref<16x8x128xf32, #tpu.memory_space<vmem>>, vector<1x8x128xf32>
    %54 = vector.shape_cast %53 : vector<1x8x128xf32> to vector<8x128xf32>
    %55 = vector.shape_cast %52 : vector<8x128xf32> to vector<1x8x128xf32>
    tpu.vector_store %arg2[%c7, %c0_31, %c0_32], %55 {strides = array<i32>} : memref<16x8x128xf32, #tpu.memory_space<vmem>>, vector<1x8x128xf32>,
    %cst_33 = arith.constant 0.546274245 : f32
    %56 = vector.broadcast %cst_33 : f32 to vector<8x128xf32>
    %57 = arith.mulf %56, %31 : vector<8x128xf32>
    %c8 = arith.constant 8 : index
    %c0_34 = arith.constant 0 : index
    %c0_35 = arith.constant 0 : index
    %58 = vector.load %arg2[%c8, %c0_34, %c0_35] : memref<16x8x128xf32, #tpu.memory_space<vmem>>, vector<1x8x128xf32>
    %59 = vector.shape_cast %58 : vector<1x8x128xf32> to vector<8x128xf32>
    %60 = vector.shape_cast %57 : vector<8x128xf32> to vector<1x8x128xf32>
    tpu.vector_store %arg2[%c8, %c0_34, %c0_35], %60 {strides = array<i32>} : memref<16x8x128xf32, #tpu.memory_space<vmem>>, vector<1x8x128xf32>,
    %cst_36 = arith.constant 4.000000e+00 : f32
    %61 = vector.broadcast %cst_36 : f32 to vector<8x128xf32>
    %62 = arith.mulf %61, %27 : vector<8x128xf32>
    %63 = arith.subf %62, %32 : vector<8x128xf32>
    %cst_37 = arith.constant -0.590043604 : f32
    %64 = vector.broadcast %cst_37 : f32 to vector<8x128xf32>
    %65 = arith.mulf %64, %3 : vector<8x128xf32>
    %cst_38 = arith.constant 3.000000e+00 : f32
    %66 = vector.broadcast %cst_38 : f32 to vector<8x128xf32>
    %67 = arith.mulf %66, %25 : vector<8x128xf32>
    %68 = arith.subf %67, %26 : vector<8x128xf32>
    %69 = arith.mulf %65, %68 : vector<8x128xf32>
    %c9 = arith.constant 9 : index
    %c0_39 = arith.constant 0 : index
    %c0_40 = arith.constant 0 : index
    %70 = vector.load %arg2[%c9, %c0_39, %c0_40] : memref<16x8x128xf32, #tpu.memory_space<vmem>>, vector<1x8x128xf32>
    %71 = vector.shape_cast %70 : vector<1x8x128xf32> to vector<8x128xf32>
    %72 = vector.shape_cast %69 : vector<8x128xf32> to vector<1x8x128xf32>
    tpu.vector_store %arg2[%c9, %c0_39, %c0_40], %72 {strides = array<i32>} : memref<16x8x128xf32, #tpu.memory_space<vmem>>, vector<1x8x128xf32>,
    %cst_41 = arith.constant 2.89061141 : f32
    %73 = vector.broadcast %cst_41 : f32 to vector<8x128xf32>
    %74 = arith.mulf %73, %28 : vector<8x128xf32>
    %75 = arith.mulf %74, %5 : vector<8x128xf32>
    %c10 = arith.constant 10 : index
    %c0_42 = arith.constant 0 : index
    %c0_43 = arith.constant 0 : index
    %76 = vector.load %arg2[%c10, %c0_42, %c0_43] : memref<16x8x128xf32, #tpu.memory_space<vmem>>, vector<1x8x128xf32>
    %77 = vector.shape_cast %76 : vector<1x8x128xf32> to vector<8x128xf32>
    %78 = vector.shape_cast %75 : vector<8x128xf32> to vector<1x8x128xf32>
    tpu.vector_store %arg2[%c10, %c0_42, %c0_43], %78 {strides = array<i32>} : memref<16x8x128xf32, #tpu.memory_space<vmem>>, vector<1x8x128xf32>,
    %cst_44 = arith.constant -0.457045794 : f32
    %79 = vector.broadcast %cst_44 : f32 to vector<8x128xf32>
    %80 = arith.mulf %79, %3 : vector<8x128xf32>
    %81 = arith.mulf %80, %63 : vector<8x128xf32>
    %c11 = arith.constant 11 : index
    %c0_45 = arith.constant 0 : index
    %c0_46 = arith.constant 0 : index
    %82 = vector.load %arg2[%c11, %c0_45, %c0_46] : memref<16x8x128xf32, #tpu.memory_space<vmem>>, vector<1x8x128xf32>
    %83 = vector.shape_cast %82 : vector<1x8x128xf32> to vector<8x128xf32>
    %84 = vector.shape_cast %81 : vector<8x128xf32> to vector<1x8x128xf32>
    tpu.vector_store %arg2[%c11, %c0_45, %c0_46], %84 {strides = array<i32>} : memref<16x8x128xf32, #tpu.memory_space<vmem>>, vector<1x8x128xf32>,
    %cst_47 = arith.constant 0.373176336 : f32
    %85 = vector.broadcast %cst_47 : f32 to vector<8x128xf32>
    %86 = arith.mulf %85, %5 : vector<8x128xf32>
    %cst_48 = arith.constant 2.000000e+00 : f32
    %87 = vector.broadcast %cst_48 : f32 to vector<8x128xf32>
    %88 = arith.mulf %87, %27 : vector<8x128xf32>
    %cst_49 = arith.constant 3.000000e+00 : f32
    %89 = vector.broadcast %cst_49 : f32 to vector<8x128xf32>
    %90 = arith.mulf %89, %32 : vector<8x128xf32>
    %91 = arith.subf %88, %90 : vector<8x128xf32>
    %92 = arith.mulf %86, %91 : vector<8x128xf32>
    %c12 = arith.constant 12 : index
    %c0_50 = arith.constant 0 : index
    %c0_51 = arith.constant 0 : index
    %93 = vector.load %arg2[%c12, %c0_50, %c0_51] : memref<16x8x128xf32, #tpu.memory_space<vmem>>, vector<1x8x128xf32>
    %94 = vector.shape_cast %93 : vector<1x8x128xf32> to vector<8x128xf32>
    %95 = vector.shape_cast %92 : vector<8x128xf32> to vector<1x8x128xf32>
    tpu.vector_store %arg2[%c12, %c0_50, %c0_51], %95 {strides = array<i32>} : memref<16x8x128xf32, #tpu.memory_space<vmem>>, vector<1x8x128xf32>,
    %cst_52 = arith.constant -0.457045794 : f32
    %96 = vector.broadcast %cst_52 : f32 to vector<8x128xf32>
    %97 = arith.mulf %96, %1 : vector<8x128xf32>
    %98 = arith.mulf %97, %63 : vector<8x128xf32>
    %c13 = arith.constant 13 : index
    %c0_53 = arith.constant 0 : index
    %c0_54 = arith.constant 0 : index
    %99 = vector.load %arg2[%c13, %c0_53, %c0_54] : memref<16x8x128xf32, #tpu.memory_space<vmem>>, vector<1x8x128xf32>
    %100 = vector.shape_cast %99 : vector<1x8x128xf32> to vector<8x128xf32>
    %101 = vector.shape_cast %98 : vector<8x128xf32> to vector<1x8x128xf32>
    tpu.vector_store %arg2[%c13, %c0_53, %c0_54], %101 {strides = array<i32>} : memref<16x8x128xf32, #tpu.memory_space<vmem>>, vector<1x8x128xf32>,
    %cst_55 = arith.constant 1.44530571 : f32
    %102 = vector.broadcast %cst_55 : f32 to vector<8x128xf32>
    %103 = arith.mulf %102, %5 : vector<8x128xf32>
    %104 = arith.mulf %103, %31 : vector<8x128xf32>
    %c14 = arith.constant 14 : index
    %c0_56 = arith.constant 0 : index
    %c0_57 = arith.constant 0 : index
    %105 = vector.load %arg2[%c14, %c0_56, %c0_57] : memref<16x8x128xf32, #tpu.memory_space<vmem>>, vector<1x8x128xf32>
    %106 = vector.shape_cast %105 : vector<1x8x128xf32> to vector<8x128xf32>
    %107 = vector.shape_cast %104 : vector<8x128xf32> to vector<1x8x128xf32>
    tpu.vector_store %arg2[%c14, %c0_56, %c0_57], %107 {strides = array<i32>} : memref<16x8x128xf32, #tpu.memory_space<vmem>>, vector<1x8x128xf32>,
    %cst_58 = arith.constant -0.590043604 : f32
    %108 = vector.broadcast %cst_58 : f32 to vector<8x128xf32>
    %109 = arith.mulf %108, %1 : vector<8x128xf32>
    %cst_59 = arith.constant 3.000000e+00 : f32
    %110 = vector.broadcast %cst_59 : f32 to vector<8x128xf32>
    %111 = arith.mulf %110, %26 : vector<8x128xf32>
    %112 = arith.subf %25, %111 : vector<8x128xf32>
    %113 = arith.mulf %109, %112 : vector<8x128xf32>
    %c15 = arith.constant 15 : index
    %c0_60 = arith.constant 0 : index
    %c0_61 = arith.constant 0 : index
    %114 = vector.load %arg2[%c15, %c0_60, %c0_61] : memref<16x8x128xf32, #tpu.memory_space<vmem>>, vector<1x8x128xf32>
    %115 = vector.shape_cast %114 : vector<1x8x128xf32> to vector<8x128xf32>
    %116 = vector.shape_cast %113 : vector<8x128xf32> to vector<1x8x128xf32>
    tpu.vector_store %arg2[%c15, %c0_60, %c0_61], %116 {strides = array<i32>} : memref<16x8x128xf32, #tpu.memory_space<vmem>>, vector<1x8x128xf32>,
    return
  }
  func.func @transform_0(%arg0: i32) -> (i32, i32, i32) {
    %c0_i32 = arith.constant 0 : i32
    %c0_i32_0 = arith.constant 0 : i32
    %c0_i32_1 = arith.constant 0 : i32
    return %c0_i32, %arg0, %c0_i32_0 : i32, i32, i32
  }
  func.func @transform_1(%arg0: i32) -> (i32, i32, i32) {
    %c0_i32 = arith.constant 0 : i32
    %c0_i32_0 = arith.constant 0 : i32
    %c0_i32_1 = arith.constant 0 : i32
    return %c0_i32, %arg0, %c0_i32_0 : i32, i32, i32
  }
}

</mosaic_0001>

<bundles_post_ra>
// kernel: tpu_custom_call.1
= control target key start
LH: loop header
LB: loop body
LE: loop exit
PB: predicated region body
PF: predicated region fallthrough
CT: control target
= control target key end

     0   :  { %6 = vsyncpa [#allocation3], 0  ;;  %s214_s0 = inlined_call_operand.hbm [shape: f32[3,8,128], index: 0, kind: input, shape index: {}]   ;;  %s215_s1 = inlined_call_operand.hbm [shape: f32[16,8,128], index: 1, kind: output, shape index: {}]  }
   0x1   :  { %7 = vsyncpa [#allocation4], 0  ;;  %s169_s6 = smov [#allocation2]   ;;  %s121_s10 = scalar_lea.hbm %s214_s0, 384 }
   0x2   :  { %s13_s7 = sshll.u32 %s169_s6, 4  ;;  %p122_p0 = scmp.ne.s32.totalorder %s214_s0, %s121_s10  ;;  %s14_s7 = int_to_ptr.vmem [resolvable:$true] %s13_s7 }
   0x3   :  { %p125_p1 = scmp.lt.u32.totalorder %s121_s10, %s214_s0 }
   0x5   :  { %p127_p2 = pnand %p125_p1, %p122_p0 }
   0x7   :  { %130 = shalt.err (!%p127_p2)
}
   0x8   :  { %s131_s15 = scalar_lea.vmem %s14_s7, 384  ;;  %p136_p4 = scmp.lt.s32.totalorder %s14_s7, %s14_s7 }
   0x9   :  { %p132_p3 = scmp.ne.s32.totalorder %s14_s7, %s131_s15  ;;  %p137_p5 = scmp.lt.s32.totalorder %s131_s15, %s131_s15 }
   0xb   :  { %p138_p6 = por %p137_p5, %p136_p4 }
   0xd   :  { %p139_p7 = pnand %p138_p6, %p132_p3 }
   0xf   :  { %142 = shalt.err (!%p139_p7)
}
  0x10   :  { %s170_s16 = smov 128   ;;  %s171_s17 = smov 8  }
  0x11   :  { %19 = dma.hbm_to_vmem [thread:$0]  %s214_s0, 384, %s14_s7, [#allocation3], %s170_s16, %s170_s16, %s171_s17  }
  0x12   :  { %165 = dma.done.wait [#allocation3], 384  }
  0x13   :  { %166 = vsyncadd [#allocation3], 4294966912  ;;  %v172_v0 = vmov 0.2820948   ;;  %v25_v1 = vld [vmem:[#allocation2 + $0x8] sm:$0xff]  ;;  %v27_v2 = vld [vmem:[#allocation2 + $0x10] sm:$0xff] }
  0x14   :  { %28 = vst [vmem:[#allocation5] sm:$0xff] %v172_v0  ;;  %v23_v3 = vld [vmem:[#allocation2] sm:$0xff]  ;;  %v29_v4 = vmul.f32 -0.48860252, %v25_v1  ;;  %v32_v5 = vmul.f32 0.48860252, %v27_v2  ;;  %v42_v8 = vmul.f32 %v27_v2, %v25_v1  ;;  %v39_v10 = vmul.f32 %v25_v1, %v25_v1 }
  0x15   :  { %v35_v6 = vmul.f32 -0.48860252, %v23_v3  ;;  %v41_v7 = vmul.f32 %v25_v1, %v23_v3  ;;  %v38_v9 = vmul.f32 %v23_v3, %v23_v3  ;;  %v40_v11 = vmul.f32 %v27_v2, %v27_v2  ;;  %s173_s0 = smov [#allocation5]  }
  0x16   :  { %31 = vst [vmem:[#allocation5 + $0x8] sm:$0xff] %v29_v4  ;;  %34 = vst [vmem:[#allocation5 + $0x10] sm:$0xff] %v32_v5  ;;  %v43_v13 = vmul.f32 %v27_v2, %v23_v3  ;;  %v65_v14 = vmul.f32 -0.5900436, %v25_v1  ;;  %v49_v16 = vmul.f32 -1.0925485, %v42_v8 }
  0x17   :  { %37 = vst [vmem:[#allocation5 + $0x18] sm:$0xff] %v35_v6  ;;  %v46_v12 = vmul.f32 1.0925485, %v41_v7  ;;  %v71_v15 = vmul.f32 2.8906114, %v41_v7  ;;  %v45_v17 = vadd.f32 %v39_v10, %v38_v9  ;;  %v52_v18 = vmul.f32 2.0, %v40_v11 }
  0x18   :  { %v44_v19 = vsub.f32 %v38_v9, %v39_v10  ;;  %v57_v20 = vmul.f32 -1.0925485, %v43_v13  ;;  %v66_v21 = vmul.f32 3.0, %v38_v9  ;;  %v63_v23 = vmul.f32 4.0, %v40_v11  ;;  %51 = vst [vmem:[#allocation5 + $0x28] sm:$0xff] %v49_v16  ;;  %s104_s20 = sshll.u32 %s173_s0, 4  ;;  %s105_s20 = int_to_ptr.vmem [resolvable:$true] %s104_s20 }
  0x19   :  { %48 = vst [vmem:[#allocation5 + $0x20] sm:$0xff] %v46_v12  ;;  %v72_v22 = vmul.f32 %v71_v15, %v27_v2  ;;  %v53_v24 = vsub.f32 %v52_v18, %v45_v17  ;;  %v75_v26 = vmul.f32 -0.4570458, %v25_v1  ;;  %v79_v27 = vmul.f32 0.37317634, %v27_v2  ;;  %s143_s21 = scalar_lea.vmem %s105_s20, 2048  ;;  %p148_p9 = scmp.lt.s32.totalorder %s105_s20, %s105_s20 }
  0x1a   :  { %v60_v25 = vmul.f32 0.54627424, %v44_v19  ;;  %59 = vst [vmem:[#allocation5 + $0x38] sm:$0xff] %v57_v20  ;;  %v67_v28 = vsub.f32 %v66_v21, %v39_v10  ;;  %v64_v29 = vsub.f32 %v63_v23, %v45_v17  ;;  %v80_v30 = vmul.f32 3.0, %v45_v17  ;;  %p144_p8 = scmp.ne.s32.totalorder %s105_s20, %s143_s21  ;;  %p149_p10 = scmp.lt.s32.totalorder %s143_s21, %s143_s21 }
  0x1b   :  { %74 = vst [vmem:[#allocation5 + $0x50] sm:$0xff] %v72_v22  ;;  %v85_v31 = vmul.f32 -0.4570458, %v23_v3  ;;  %v54_v32 = vmul.f32 0.31539157, %v53_v24  ;;  %v94_v40 = vmul.f32 3.0, %v39_v10 }
  0x1c   :  { %62 = vst [vmem:[#allocation5 + $0x40] sm:$0xff] %v60_v25  ;;  %v89_v33 = vmul.f32 1.4453057, %v27_v2  ;;  %v68_v34 = vmul.f32 %v67_v28, %v65_v14  ;;  %v76_v35 = vmul.f32 %v75_v26, %v64_v29  ;;  %v81_v36 = vsub.f32 %v52_v18, %v80_v30  ;;  %p150_p11 = por %p149_p10, %p148_p9 }
  0x1d   :  { %v86_v37 = vmul.f32 %v85_v31, %v64_v29  ;;  %56 = vst [vmem:[#allocation5 + $0x30] sm:$0xff] %v54_v32  ;;  %v93_v39 = vmul.f32 -0.5900436, %v23_v3  ;;  %v95_v42 = vsub.f32 %v38_v9, %v94_v40 }
  0x1e   :  { %v90_v38 = vmul.f32 %v89_v33, %v44_v19  ;;  %70 = vst [vmem:[#allocation5 + $0x48] sm:$0xff] %v68_v34  ;;  %78 = vst [vmem:[#allocation5 + $0x58] sm:$0xff] %v76_v35  ;;  %v82_v41 = vmul.f32 %v81_v36, %v79_v27  ;;  %p151_p12 = pnand %p150_p11, %p144_p8 }
  0x1f   :  { %88 = vst [vmem:[#allocation5 + $0x68] sm:$0xff] %v86_v37  ;;  %v96_v43 = vmul.f32 %v95_v42, %v93_v39 }
  0x20   :  { %92 = vst [vmem:[#allocation5 + $0x70] sm:$0xff] %v90_v38  ;;  %84 = vst [vmem:[#allocation5 + $0x60] sm:$0xff] %v82_v41 }
  0x21   :  { %98 = vst [vmem:[#allocation5 + $0x78] sm:$0xff] %v96_v43 }
  0x22   :  { %154 = shalt.err (!%p151_p12)
}
  0x23   :  { %s155_s24 = scalar_lea.hbm %s215_s1, 2048 }
  0x24   :  { %p156_p13 = scmp.ne.s32.totalorder %s215_s1, %s155_s24  ;;  %p159_p0 = scmp.lt.u32.totalorder %s155_s24, %s215_s1 }
  0x26   :  { %p161_p1 = pnand %p159_p0, %p156_p13 }
  0x28   :  { %164 = shalt.err (!%p161_p1)
}
  0x29   :  { %110 = dma.vmem_to_hbm [thread:$0]  %s105_s20, 2048, %s215_s1, [#allocation4], %s170_s16, %s170_s16, %s171_s17  }
  0x2a   :  { %167 = dma.done.wait [#allocation4], 2048  }
  0x2b   :  { %168 = vsyncadd [#allocation4], 4294965248 }
  0x2c   :  { %114 = vsyncpa [#allocation3], 1 }
  0x2d   :  { %115 = vsyncpa [#allocation4], 1 }

</bundles_post_ra>
